<compile_context>
chip_gen: v5e
topology: v5e:2x2
jax: 0.10.0
libtpu: 0.0.40
codegen_flags: <defaults>
</compile_context>

<pallas_src>
import functools

import jax
import jax.numpy as jnp
from jax.experimental import pallas as pl
from jax.experimental.pallas import tpu as pltpu

_LANE = 128
_SUBLANE = 8
# One conservative budget that is safe on v5e/v6e (128 MiB VMEM) and v7x
# (64 MiB physical / 32 MiB scoped default).
_VMEM_LIMIT_BYTES = 48 * 1024 * 1024
_VMEM_BUDGET_BYTES = 40 * 1024 * 1024
_RESIDENT_PRE_BYTES = 12 * 1024 * 1024   # 2x pre_sup slab must fit under this


def _round_up(v, m):
    return ((v + m - 1) // m) * m


def _tile_reduction(dim, target, quantum=_LANE):
    """Tile for the contraction axis: the full dim (single block, always a
    legal block shape) or a multiple-of-128 tile dividing the 128-padded dim.
    Returns (tile, padded_dim)."""
    target = max(quantum, (target // quantum) * quantum)
    if dim <= target:
        return dim, dim
    dim_p = _round_up(dim, quantum)
    t = target
    while dim_p % t:
        t -= quantum
    return t, dim_p


def _tile_rows(dim, target, quantum=_SUBLANE, min_blocks=2):
    """Tile for the output-row axis. Guarantees >= min_blocks row blocks when
    the dim allows it (feeds both v7x TensorCores) and never returns a whole
    huge dim (no VMEM blowup). Returns (tile, padded_dim)."""
    target = max(quantum, (target // quantum) * quantum)
    if dim <= quantum * min_blocks:
        t = _round_up(dim, quantum)
        return t, t
    if dim <= target * min_blocks:
        t = _round_up(pl.cdiv(dim, min_blocks), quantum)
        return t, _round_up(dim, t)
    dim_p = _round_up(dim, quantum)
    t = target
    while dim_p % t:
        t -= quantum
    return t, dim_p


def _stage1_row_tile(k_rows, f_in):
    """Row tile for stage 1 (x @ W): whole thing if small, else keep the x
    block around <= 2 MiB and divide k_rows exactly."""
    if k_rows * f_in * 4 <= 8 * 1024 * 1024 or k_rows % _SUBLANE:
        return k_rows
    t = min(k_rows,
            max(_SUBLANE, ((2 * 1024 * 1024 // (4 * f_in)) // _SUBLANE) * _SUBLANE))
    while k_rows % t:
        t -= _SUBLANE
    return t


# ---------------------------------------------------------------------------
# Stage 1: pre_sup[s] = x @ W_s   -> [S, K, F_pad] bf16 (f32 MXU accumulation)
# ---------------------------------------------------------------------------
def _presup_kernel(x_ref, w_ref, out_ref):
    # x is cast to bf16 in-VMEM (no extra HBM pass); W is pre-cast (tiny).
    out_ref[...] = jnp.dot(
        x_ref[...].astype(jnp.bfloat16), w_ref[...],
        preferred_element_type=jnp.float32,
    ).astype(out_ref.dtype)


def _compute_presup(x_pad, w_bf16):
    k_rows, f_in = x_pad.shape
    s, _, f_pad = w_bf16.shape
    # TODO(synk): for extremely wide inputs (f_in >~ 32k) stage 1 should also
    # tile the f_in contraction; typical GCN hidden dims do not need it.
    tm1 = _stage1_row_tile(k_rows, f_in)
    return pl.pallas_call(
        _presup_kernel,
        out_shape=jax.ShapeDtypeStruct((s, k_rows, f_pad), jnp.bfloat16),
        grid_spec=pltpu.PrefetchScalarGridSpec(
            num_scalar_prefetch=0,
            grid=(k_rows // tm1, s),
            in_specs=[
                pl.BlockSpec((tm1, f_in), lambda r, i: (r, 0)),
                pl.BlockSpec((pl.Squeezed(), f_in, f_pad), lambda r, i: (i, 0, 0)),
            ],
            out_specs=pl.BlockSpec((pl.Squeezed(), tm1, f_pad), lambda r, i: (i, r, 0)),
        ),
        compiler_params=pltpu.CompilerParams(
            dimension_semantics=("parallel", "parallel"),
            vmem_limit_bytes=_VMEM_LIMIT_BYTES,
        ),
    )(x_pad, w_bf16)


# ---------------------------------------------------------------------------
# Stage 2: out = act( sum_s support[s] @ pre_sup[s] )
#   - f32 supports cast to bf16 in-VMEM, f32 accumulation directly in out_ref
#   - grid = (row_tiles["parallel"], S, k_tiles) with reductions last
#   - pre_sup either VMEM-resident (sliced in-kernel) or streamed per tile
# ---------------------------------------------------------------------------
def _gcn_kernel_streamed(sup_ref, pre_ref, out_ref, *, act_fn):
    i = pl.program_id(1)          # support index    (reduction)
    k = pl.program_id(2)          # contraction tile (reduction)

    @pl.when((i == 0) & (k == 0))
    def _():
        out_ref[...] = jnp.zeros_like(out_ref)

    out_ref[...] += jnp.dot(
        sup_ref[...].astype(jnp.bfloat16), pre_ref[...],
        preferred_element_type=jnp.float32,
    )

    if act_fn is not None:
        last = (i == pl.num_programs(1) - 1) & (k == pl.num_programs(2) - 1)

        @pl.when(last)
        def _():
            out_ref[...] = act_fn(out_ref[...])


def _gcn_kernel_resident(sup_ref, pre_ref, out_ref, *, act_fn, tk):
    i = pl.program_id(1)          # support index    (reduction)
    k = pl.program_id(2)          # contraction tile (reduction)

    @pl.when((i == 0) & (k == 0))
    def _():
        out_ref[...] = jnp.zeros_like(out_ref)

    k0 = pl.multiple_of(k * tk, tk)
    pre_blk = pre_ref[i, pl.ds(k0, tk), :]      # VMEM-resident pre_sup slab
    out_ref[...] += jnp.dot(
        sup_ref[...].astype(jnp.bfloat16), pre_blk,
        preferred_element_type=jnp.float32,
    )

    if act_fn is not None:
        last = (i == pl.num_programs(1) - 1) & (k == pl.num_programs(2) - 1)

        @pl.when(last)
        def _():
            out_ref[...] = act_fn(out_ref[...])


def graph_convolution(x, weights, supports, act_func=None, featureless=False,
                      row_tile=1024, k_tile=2048, pre_resident=None):
    """Pallas implementation of GraphConvolution.forward (eval mode).

    x:        [N, F_in]          (ignored / may be None when featureless=True)
    weights:  [S, F_in, F_out]   stacked W0..W_{S-1}
    supports: [S, N, N]          ([S, N, F_in] when featureless=True)
    """
    # dropout_rate = 0.0 -> identity (eval-mode semantics).
    # TODO(synk): the module's `bias` parameter is never added in forward(),
    # so it is intentionally not implemented here.
    s, f_in, f_out = weights.shape
    n = supports.shape[1]
    k_dim = supports.shape[2]
    sup_bytes = jnp.dtype(supports.dtype).itemsize

    f_pad = _round_up(f_out, _LANE)

    # --- pick tiles under the VMEM budget (double-buffered working set) -----
    rt, kt = row_tile, k_tile
    while True:
        tm, n_pad = _tile_rows(n, rt)
        tk, k_pad = _tile_reduction(k_dim, kt)
        est = (2 * tm * tk * sup_bytes          # support block stream (f32)
               + 2 * tk * f_pad * 2             # pre_sup block stream (bf16)
               + 2 * tm * f_pad * 4)            # resident f32 output block
        if est <= _VMEM_BUDGET_BYTES or (rt <= 256 and kt <= 256):
            break
        if kt > rt:
            kt = max(256, kt // 2)
        else:
            rt = max(256, rt // 2)

    # --- zero-pad only when the graph size is not tile-aligned --------------
    if n_pad != n or k_pad != k_dim:
        # TODO(synk): awkward (non-8/128-aligned) sizes force a one-off zero
        # pad pass over `supports`; a masked-tail kernel would avoid it.
        supports = jnp.pad(supports, ((0, 0), (0, n_pad - n), (0, k_pad - k_dim)))

    # --- pre_sup -------------------------------------------------------------
    w_bf16 = jnp.pad(weights, ((0, 0), (0, 0), (0, f_pad - f_out))).astype(jnp.bfloat16)

    if featureless:
        assert k_dim == f_in
        pre = w_bf16
        if k_pad != f_in:
            pre = jnp.pad(pre, ((0, 0), (0, k_pad - f_in), (0, 0)))
        out_dtype = weights.dtype
    else:
        assert x.shape == (k_dim, f_in)
        x_pad = x if k_pad == k_dim else jnp.pad(x, ((0, k_pad - k_dim), (0, 0)))
        pre = _compute_presup(x_pad, w_bf16)
        out_dtype = x.dtype

    # --- keep the whole pre_sup slab in VMEM when it comfortably fits -------
    pre_bytes = s * k_pad * f_pad * 2
    if pre_resident is None:
        pre_resident = (2 * pre_bytes <= _RESIDENT_PRE_BYTES
                        and est + 2 * pre_bytes <= _VMEM_BUDGET_BYTES)

    sup_spec = pl.BlockSpec((pl.Squeezed(), tm, tk), lambda r, i, k: (i, r, k))
    out_spec = pl.BlockSpec((tm, f_pad), lambda r, i, k: (r, 0))
    if pre_resident:
        kernel = functools.partial(_gcn_kernel_resident, act_fn=act_func, tk=tk)
        pre_spec = pl.BlockSpec((s, k_pad, f_pad), lambda r, i, k: (0, 0, 0))
    else:
        kernel = functools.partial(_gcn_kernel_streamed, act_fn=act_func)
        pre_spec = pl.BlockSpec((pl.Squeezed(), tk, f_pad), lambda r, i, k: (i, k, 0))

    out_full = pl.pallas_call(
        kernel,
        out_shape=jax.ShapeDtypeStruct((n_pad, f_pad), jnp.float32),
        grid_spec=pltpu.PrefetchScalarGridSpec(
            num_scalar_prefetch=0,
            grid=(n_pad // tm, s, k_pad // tk),
            in_specs=[sup_spec, pre_spec],
            out_specs=out_spec,
        ),
        compiler_params=pltpu.CompilerParams(
            dimension_semantics=("parallel", "arbitrary", "arbitrary"),
            vmem_limit_bytes=_VMEM_LIMIT_BYTES,
        ),
    )(supports, pre)

    out = out_full[:n, :f_out]
    return out if out.dtype == out_dtype else out.astype(out_dtype)


def reference(x, weights, supports, act_func=None, featureless=False):
    out = None
    for i in range(weights.shape[0]):
        pre_sup = weights[i] if featureless else x @ weights[i]
        term = supports[i] @ pre_sup
        out = term if out is None else out + term
    if act_func is not None:
        out = act_func(out)
    return out


if __name__ == "__main__":
    # Small, deterministic synthetic problem.
    N = 256       # number of graph nodes
    F_IN = 32     # input_dim
    F_OUT = 16    # output_dim
    S = 2         # len(support)

    key = jax.random.PRNGKey(0)
    kx, kw, ks, kf = jax.random.split(key, 4)

    x = jax.random.normal(kx, (N, F_IN), dtype=jnp.float32)
    weights = jax.random.normal(kw, (S, F_IN, F_OUT), dtype=jnp.float32)
    supports = jax.random.uniform(ks, (S, N, N), dtype=jnp.float32) / N

    # 1) Default tiling: 2 parallel row blocks, VMEM-resident pre_sup.
    out = jax.block_until_ready(graph_convolution(x, weights, supports))
    ref = reference(x, weights, supports)
    assert out.shape == (N, F_OUT)
    assert jnp.allclose(out, ref, atol=2e-2, rtol=2e-2), "mismatch (default)"

    # 2) Forced streamed pre_sup, multi-tile grid (2x S x 2) + fused ReLU.
    out_r = jax.block_until_ready(
        graph_convolution(x, weights, supports, act_func=jax.nn.relu,
                          row_tile=128, k_tile=128, pre_resident=False))
    ref_r = reference(x, weights, supports, act_func=jax.nn.relu)
    assert jnp.allclose(out_r, ref_r, atol=2e-2, rtol=2e-2), "mismatch (tiled+relu)"

    # 3) featureless=True branch: out = sum_i support[i] @ W_i.
    sup_fl = jax.random.uniform(kf, (S, N, F_IN), dtype=jnp.float32) / F_IN
    out_f = jax.block_until_ready(
        graph_convolution(None, weights, sup_fl, featureless=True))
    ref_f = reference(None, weights, sup_fl, featureless=True)
    assert jnp.allclose(out_f, ref_f, atol=2e-2, rtol=2e-2), "mismatch (featureless)"

    # 4) Non-tile-aligned graph size (exercises the zero-pad path).
    N2 = 200
    x2 = jax.random.normal(kx, (N2, F_IN), dtype=jnp.float32)
    sup2 = jax.random.uniform(ks, (S, N2, N2), dtype=jnp.float32) / N2
    out2 = jax.block_until_ready(graph_convolution(x2, weights, sup2))
    ref2 = reference(x2, weights, sup2)
    assert out2.shape == (N2, F_OUT)
    assert jnp.allclose(out2, ref2, atol=2e-2, rtol=2e-2), "mismatch (padded)"

    print("KERNEL_OK")
</pallas_src>

<mosaic_0001>
module attributes {stable_mosaic.version = 11 : i64} {
  func.func @_presup_kernel(%arg0: i32, %arg1: i32, %arg2: memref<256x32xf32, #tpu.memory_space<vmem>>, %arg3: memref<1x32x128xbf16, #tpu.memory_space<vmem>>, %arg4: memref<1x256x128xbf16, #tpu.memory_space<vmem>>) attributes {dimension_semantics = [#tpu.dimension_semantics<parallel>, #tpu.dimension_semantics<parallel>], iteration_bounds = array<i64: 1, 2>, scalar_prefetch = 0 : i64, scratch_operands = 0 : i64, tpu.core_type = #tpu.core_type<tc>, window_params = [{transform_indices = @transform_0, window_bounds = array<i64: 256, 32>}, {transform_indices = @transform_1, window_bounds = array<i64: 1, 32, 128>}, {transform_indices = @transform_2, window_bounds = array<i64: 1, 256, 128>}]} {
    %c0 = arith.constant 0 : index
    %c0_0 = arith.constant 0 : index
    %0 = vector.load %arg2[%c0, %c0_0] : memref<256x32xf32, #tpu.memory_space<vmem>>, vector<256x32xf32>
    %1 = arith.truncf %0 : vector<256x32xf32> to vector<256x32xbf16>
    %c0_1 = arith.constant 0 : index
    %c0_2 = arith.constant 0 : index
    %c0_3 = arith.constant 0 : index
    %2 = vector.load %arg3[%c0_1, %c0_2, %c0_3] : memref<1x32x128xbf16, #tpu.memory_space<vmem>>, vector<1x32x128xbf16>
    %3 = vector.shape_cast %2 : vector<1x32x128xbf16> to vector<32x128xbf16>
    %cst = arith.constant dense<0.000000e+00> : vector<256x128xf32>
    %4 = tpu.matmul %1, %3, %cst {dimension_numbers = #tpu.dot_dimension_numbers<[1], [0], [0], [1], [0, 0, 1, 1], [], []>} : vector<256x32xbf16>, vector<32x128xbf16>, vector<256x128xf32> -> vector<256x128xf32>
    %5 = arith.truncf %4 : vector<256x128xf32> to vector<256x128xbf16>
    %c0_4 = arith.constant 0 : index
    %c0_5 = arith.constant 0 : index
    %c0_6 = arith.constant 0 : index
    %6 = vector.load %arg4[%c0_4, %c0_5, %c0_6] : memref<1x256x128xbf16, #tpu.memory_space<vmem>>, vector<1x256x128xbf16>
    %7 = vector.shape_cast %6 : vector<1x256x128xbf16> to vector<256x128xbf16>
    %8 = vector.shape_cast %5 : vector<256x128xbf16> to vector<1x256x128xbf16>
    tpu.vector_store %arg4[%c0_4, %c0_5, %c0_6], %8 {strides = array<i32>} : memref<1x256x128xbf16, #tpu.memory_space<vmem>>, vector<1x256x128xbf16>,
    return
  }
  func.func @transform_0(%arg0: i32, %arg1: i32) -> (i32, i32) {
    %c0_i32 = arith.constant 0 : i32
    %c0_i32_0 = arith.constant 0 : i32
    return %arg0, %c0_i32 : i32, i32
  }
  func.func @transform_1(%arg0: i32, %arg1: i32) -> (i32, i32, i32) {
    %c0_i32 = arith.constant 0 : i32
    %c0_i32_0 = arith.constant 0 : i32
    %c0_i32_1 = arith.constant 0 : i32
    return %arg1, %c0_i32, %c0_i32_0 : i32, i32, i32
  }
  func.func @transform_2(%arg0: i32, %arg1: i32) -> (i32, i32, i32) {
    %c0_i32 = arith.constant 0 : i32
    %c0_i32_0 = arith.constant 0 : i32
    return %arg1, %arg0, %c0_i32 : i32, i32, i32
  }
}

</mosaic_0001>

<bundles_post_ra>
// kernel: tpu_custom_call.1
= control target key start
LH: loop header
LB: loop body
LE: loop exit
PB: predicated region body
PF: predicated region fallthrough
CT: control target
= control target key end

     0   :  { %7 = vsyncpa [#allocation3], 0  ;;  %s1081_s0 = inlined_call_operand.vmem [shape: f32[256,32], index: 0, kind: input, shape index: {}]   ;;  %s1082_s1 = inlined_call_operand.vmem [shape: bf16[2,32,128], index: 1, kind: input, shape index: {}]   ;;  %s1083_s2 = inlined_call_operand.hbm [shape: bf16[2,256,128], index: 2, kind: output, shape index: {}]  }
   0x1   :  { %9 = vsyncpa [#allocation3 + $0x1], 0  ;;  %s849_s9 = smov 0   ;;  %s851_s10 = smov 0  }
   0x2   :  { %s853_s11 = smov 0   ;;  %s855_s12 = smov 0  }
   0x3   :  { %s857_s13 = smov 0   ;;  %s859_s14 = smov 0  }
   0x4 LB: > { %s552_s15 = sadd.s32 4294967295, %s830_s14   ;;  %s553_s16 = sadd.s32 4294967294, %s830_s14   ;;  %s830_s14 = sphi %s859_s14, %s15_s14   ;;  %s826_s13 = sphi %s857_s13, %s1090_s13   ;;  %s822_s12 = sphi %s855_s12, %s1089_s12   ;;  %s818_s11 = sphi %s853_s11, %s1088_s11   ;;  %s814_s10 = sphi %s851_s10, %s1087_s10   ;;  %s810_s9 = sphi %s849_s9, %s1086_s9  }
   0x5   : > { %s24_s17 = sadd.s32 1, %s826_s13  ;;  %s88_s18 = sadd.s32 1, %s818_s11 }
   0x6   : > { %p25_p0 = scmp.ge.s32.totalorder %s24_s17, 2  ;;  %p98_p1 = scmp.ne.s32.totalorder %s818_s11, %s814_s10 }
   0x7   : > { %p99_p2 = scmp.eq.s32.totalorder %s552_s15, 1  ;;  %p104_p3 = scmp.ne.s32.totalorder %s814_s10, %s810_s9 }
   0x8   : > { %s1092_s17 = smov (%p25_p0, %s24_s17), 0  ;;  %p105_p5 = scmp.eq.s32.totalorder %s553_s16, 1 }
   0x9   : > { %p889_p4 = por %p99_p2, %p98_p1  ;;  %s83_s20 = ssub.s32 %s826_s13, %s1092_s17 }
   0xa   : > { %p557_p6 = scmp.ge.s32.totalorder %s830_s14, 1  ;;  %p86_p7 = scmp.eq.s32.totalorder %s83_s20, 0 }
   0xb   : > { %p896_p8 = por %p105_p5, %p104_p3  ;;  %p140_p9 = scmp.lt.s32.totalorder %s830_s14, 3 }
   0xc   : > { %s902_s22 = scalar_select %p86_p7, %s818_s11, %s88_s18  }
   0xd   : > { %p141_p10 = pnand %p557_p6, %p140_p9 }
   0xe   : > { %p173_p11 = scmp.lt.s32.totalorder (!%p141_p10), %s822_s12, 1  ;;  %s164_s16 = sand.u32 (!%p141_p10), 1, %s814_s10  }
   0xf   : > { %144 = sbr.rel (%p141_p10) target bundleno = 228 (0xe4), region = 28  ;;  %s558_s18 = sshll.u32 (!%p141_p10), %s164_s16, 7 }
  0x10   : > { %s1024_s20 = scalar_lea.vmem (!%p141_p10), [#allocation2], %s558_s18  ;;  %s772_s5 = scalar_lea.hbm (!%p141_p10), %s1083_s2, 256 }
  0x14   : > { %s174_s23 = scalar_select %p173_p11, %s822_s12, 1  ;;  %v180_v1 = vld [vmem:[%s1081_s0] sm:$0xff]  ;;  %v181_v2 = vld [vmem:[%s1081_s0 + $0x8] sm:$0xff]  ;;  %vm244_vm0 = vcmask 261120   ;;  %v182_v14 = vld [vmem:[%s1081_s0 + $0x10] sm:$0xff] }
  0x15   : > { %v188_v3 = vld [vmem:[%s1081_s0 + $0x40] sm:$0xff]  ;;  %v189_v5 = vld [vmem:[%s1081_s0 + $0x48] sm:$0xff]  ;;  %v212_v10 = vpack.c.bf16 %v181_v2, %v180_v1  ;;  %v183_v15 = vld [vmem:[%s1081_s0 + $0x18] sm:$0xff] }
  0x16   : > { %s590_s24 = sshll.u32 %s174_s23, 4  ;;  %v196_v6 = vld [vmem:[%s1081_s0 + $0x80] sm:$0xff]  ;;  %v197_v7 = vld [vmem:[%s1081_s0 + $0x88] sm:$0xff]  ;;  %v216_v11 = vpack.c.bf16 %v189_v5, %v188_v3  ;;  %v190_v16 = vld [vmem:[%s1081_s0 + $0x50] sm:$0xff]  ;;  %v213_v22 = vpack.c.bf16 %v183_v15, %v182_v14  ;;  %s593_s23 = sshll.u32 %s822_s12, 7 }
  0x17   : > { %s177_s27 = scalar_lea.vmem %s1082_s1, %s590_s24  ;;  %v204_v8 = vld [vmem:[%s1081_s0 + $0xc0] sm:$0xff]  ;;  %v205_v9 = vld [vmem:[%s1081_s0 + $0xc8] sm:$0xff]  ;;  %v220_v12 = vpack.c.bf16 %v197_v7, %v196_v6  ;;  %v191_v17 = vld [vmem:[%s1081_s0 + $0x58] sm:$0xff]  ;;  %s460_s26 = scalar_lea.hbm %s1083_s2, %s593_s23 }
  0x18   : > { %v592_v0 = vld [vmem:[%s177_s27 + $0x8] sm:$0xff]  ;;  %v591_v4 = vld [vmem:[%s177_s27] sm:$0xff]  ;;  %v224_v13 = vpack.c.bf16 %v205_v9, %v204_v8  ;;  %v198_v18 = vld [vmem:[%s1081_s0 + $0x90] sm:$0xff]  ;;  %v217_v23 = vpack.c.bf16 %v191_v17, %v190_v16  ;;  %s461_s27 = sshll.u32 %s1024_s20, 4  ;;  %s463_s28 = sshll.u32 %s460_s26, 4  ;;  %s462_s27 = int_to_ptr.vmem [resolvable:$true] %s461_s27  ;;  %s464_s28 = int_to_ptr.hbm [resolvable:$true] %s463_s28 }
  0x19   : > { %299 = vmatpush.bf16.msra.mxu0 %v592_v0  ;;  %689 = vmatpush.bf16.msra.mxu1 %v592_v0  ;;  %v199_v19 = vld [vmem:[%s1081_s0 + $0x98] sm:$0xff]  ;;  %v206_v20 = vld [vmem:[%s1081_s0 + $0xd0] sm:$0xff]  ;;  %v184_v26 = vld [vmem:[%s1081_s0 + $0x20] sm:$0xff]  ;;  %s447_s12 = scalar_lea.sflag [#allocation3], %s164_s16  ;;  %s766_s29 = sshra.s32 %s464_s28, 4  ;;  %s767_s29 = int_to_ptr.hbm [resolvable:$true] %s766_s29 }
  0x1a   : > { %690 = vmatpush.bf16.msra.mxu2 %v592_v0  ;;  %691 = vmatpush.bf16.msra.mxu3 %v592_v0  ;;  %v207_v21 = vld [vmem:[%s1081_s0 + $0xd8] sm:$0xff]  ;;  %v221_v24 = vpack.c.bf16 %v199_v19, %v198_v18  ;;  %v185_v27 = vld [vmem:[%s1081_s0 + $0x28] sm:$0xff]  ;;  %v192_v28 = vld [vmem:[%s1081_s0 + $0x60] sm:$0xff]  ;;  %s768_s30 = scalar_lea.hbm %s767_s29, 128  ;;  %p773_p1 = scmp.lt.s32.totalorder %s767_s29, %s1083_s2 }
  0x1b   : > { %v225_v25 = vpack.c.bf16 %v207_v21, %v206_v20  ;;  %v193_v29 = vld [vmem:[%s1081_s0 + $0x68] sm:$0xff]  ;;  %v200_v30 = vld [vmem:[%s1081_s0 + $0xa0] sm:$0xff]  ;;  %v214_v34 = vpack.c.bf16 %v185_v27, %v184_v26  ;;  %v186_v38 = vld [vmem:[%s1081_s0 + $0x30] sm:$0xff]  ;;  %p769_p12 = scmp.ne.s32.totalorder %s767_s29, %s768_s30  ;;  %p774_p2 = scmp.lt.s32.totalorder %s772_s5, %s768_s30 }
  0x1c   : > { %v201_v31 = vld [vmem:[%s1081_s0 + $0xa8] sm:$0xff]  ;;  %v208_v32 = vld [vmem:[%s1081_s0 + $0xe0] sm:$0xff]  ;;  %v218_v35 = vpack.c.bf16 %v193_v29, %v192_v28  ;;  %v187_v39 = vld [vmem:[%s1081_s0 + $0x38] sm:$0xff] }
  0x1d   : > { %300 = vmatpush.bf16.msra.mxu0 %v591_v4  ;;  %692 = vmatpush.bf16.msra.mxu1 %v591_v4  ;;  %v209_v33 = vld [vmem:[%s1081_s0 + $0xe8] sm:$0xff]  ;;  %v222_v36 = vpack.c.bf16 %v201_v31, %v200_v30  ;;  %v194_v40 = vld [vmem:[%s1081_s0 + $0x70] sm:$0xff]  ;;  %v195_v41 = vld [vmem:[%s1081_s0 + $0x78] sm:$0xff]  ;;  %v215_v46 = vpack.c.bf16 %v187_v39, %v186_v38  ;;  %p770_p13 = pnand %p769_p12, %p889_p4  ;;  %p775_p3 = por %p774_p2, %p773_p1 }
  0x1e   : > { %693 = vmatpush.bf16.msra.mxu2 %v591_v4  ;;  %694 = vmatpush.bf16.msra.mxu3 %v591_v4  ;;  %v226_v37 = vpack.c.bf16 %v209_v33, %v208_v32  ;;  %v202_v42 = vld [vmem:[%s1081_s0 + $0xb0] sm:$0xff]  ;;  %v203_v43 = vld [vmem:[%s1081_s0 + $0xb8] sm:$0xff]  ;;  %v219_v47 = vpack.c.bf16 %v195_v41, %v194_v40 }
  0x1f   : > { %v210_v44 = vld [vmem:[%s1081_s0 + $0xf0] sm:$0xff]  ;;  %v211_v45 = vld [vmem:[%s1081_s0 + $0xf8] sm:$0xff]  ;;  %v223_v48 = vpack.c.bf16 %v203_v43, %v202_v42  ;;  %p771_p0 = pneg %p770_p13 }
  0x20   : > { %569 = vmatmul.msk.bf16.vlgmr.msra.gmra.mxu0 %vm244_vm0, %v212_v10  ;;  %573 = vmatmul.msk.bf16.vlgmr.msra.gmra.mxu1 %vm244_vm0, %v216_v11  ;;  %v227_v49 = vpack.c.bf16 %v211_v45, %v210_v44 }
  0x21   : > { %577 = vmatmul.msk.bf16.vlgmr.msra.gmra.mxu2 %vm244_vm0, %v220_v12  ;;  %581 = vmatmul.msk.bf16.vlgmr.msra.gmra.mxu3 %vm244_vm0, %v224_v13  ;;  %p776_p5 = pnand %p775_p3, %p771_p0 }
  0x30   : > { %570 = vmatmul.msk.bf16.gmra.mxu0 %vm244_vm0, %v213_v22  ;;  %574 = vmatmul.msk.bf16.gmra.mxu1 %vm244_vm0, %v217_v23 }
  0x31   : > { %578 = vmatmul.msk.bf16.gmra.mxu2 %vm244_vm0, %v221_v24  ;;  %582 = vmatmul.msk.bf16.gmra.mxu3 %vm244_vm0, %v225_v25 }
  0x40   : > { %571 = vmatmul.msk.bf16.gmra.mxu0 %vm244_vm0, %v214_v34  ;;  %575 = vmatmul.msk.bf16.gmra.mxu1 %vm244_vm0, %v218_v35 }
  0x41   : > { %579 = vmatmul.msk.bf16.gmra.mxu2 %vm244_vm0, %v222_v36  ;;  %583 = vmatmul.msk.bf16.gmra.mxu3 %vm244_vm0, %v226_v37 }
  0x50   : > { %572 = vmatmul.msk.bf16.gmra.mxu0 %vm244_vm0, %v215_v46  ;;  %576 = vmatmul.msk.bf16.gmra.mxu1 %vm244_vm0, %v219_v47 }
  0x51   : > { %580 = vmatmul.msk.bf16.gmra.mxu2 %vm244_vm0, %v223_v48  ;;  %584 = vmatmul.msk.bf16.gmra.mxu3 %vm244_vm0, %v227_v49 }
  0x9d   : > { %v302_v50 = vpop.f32.mrf.mxu0  ;;  %v322_v51 = vpop.f32.mrf.mxu1 }
  0xa4   : > { %v342_v52 = vpop.f32.mrf.mxu2  ;;  %v362_v53 = vpop.f32.mrf.mxu3 }
  0xa5   : > { %v304_v54 = vpop.f32.mrf.mxu0  ;;  %v324_v55 = vpop.f32.mrf.mxu1 }
  0xa6   : > { %v597_v56 = vpack.c.bf16 %v304_v54, %v302_v50  ;;  %v617_v57 = vpack.c.bf16 %v324_v55, %v322_v51 }
  0xa8   : > { %598 = vst [vmem:[%s1024_s20] sm:$0xff] %v597_v56  }
  0xa9   : > { %677 = vst [vmem:[%s1024_s20 + $0x20] sm:$0xff] %v617_v57  }
  0xac   : > { %v344_v58 = vpop.f32.mrf.mxu2  ;;  %v364_v59 = vpop.f32.mrf.mxu3 }
  0xad   : > { %v637_v60 = vpack.c.bf16 %v344_v58, %v342_v52  ;;  %v657_v61 = vpack.c.bf16 %v364_v59, %v362_v53  ;;  %v307_v62 = vpop.f32.mrf.mxu0  ;;  %v327_v63 = vpop.f32.mrf.mxu1 }
  0xaf   : > { %681 = vst [vmem:[%s1024_s20 + $0x40] sm:$0xff] %v637_v60  }
  0xb0   : > { %685 = vst [vmem:[%s1024_s20 + $0x60] sm:$0xff] %v657_v61  }
  0xb4   : > { %v347_v0 = vpop.f32.mrf.mxu2  ;;  %v367_v1 = vpop.f32.mrf.mxu3 }
  0xb5   : > { %v309_v2 = vpop.f32.mrf.mxu0  ;;  %v329_v3 = vpop.f32.mrf.mxu1 }
  0xb6   : > { %v602_v4 = vpack.c.bf16 %v309_v2, %v307_v62  ;;  %v622_v5 = vpack.c.bf16 %v329_v3, %v327_v63 }
  0xb8   : > { %674 = vst [vmem:[%s1024_s20 + $0x8] sm:$0xff] %v602_v4  }
  0xb9   : > { %678 = vst [vmem:[%s1024_s20 + $0x28] sm:$0xff] %v622_v5  }
  0xbc   : > { %v349_v6 = vpop.f32.mrf.mxu2  ;;  %v369_v7 = vpop.f32.mrf.mxu3 }
  0xbd   : > { %v642_v8 = vpack.c.bf16 %v349_v6, %v347_v0  ;;  %v662_v9 = vpack.c.bf16 %v369_v7, %v367_v1  ;;  %v312_v10 = vpop.f32.mrf.mxu0  ;;  %v332_v11 = vpop.f32.mrf.mxu1 }
  0xbf   : > { %682 = vst [vmem:[%s1024_s20 + $0x48] sm:$0xff] %v642_v8  }
  0xc0   : > { %686 = vst [vmem:[%s1024_s20 + $0x68] sm:$0xff] %v662_v9  }
  0xc4   : > { %v352_v12 = vpop.f32.mrf.mxu2  ;;  %v372_v13 = vpop.f32.mrf.mxu3 }
  0xc5   : > { %v314_v14 = vpop.f32.mrf.mxu0  ;;  %v334_v15 = vpop.f32.mrf.mxu1 }
  0xc6   : > { %v607_v16 = vpack.c.bf16 %v314_v14, %v312_v10  ;;  %v627_v17 = vpack.c.bf16 %v334_v15, %v332_v11 }
  0xc8   : > { %675 = vst [vmem:[%s1024_s20 + $0x10] sm:$0xff] %v607_v16  }
  0xc9   : > { %679 = vst [vmem:[%s1024_s20 + $0x30] sm:$0xff] %v627_v17  }
  0xcc   : > { %v354_v18 = vpop.f32.mrf.mxu2  ;;  %v374_v19 = vpop.f32.mrf.mxu3 }
  0xcd   : > { %v647_v20 = vpack.c.bf16 %v354_v18, %v352_v12  ;;  %v667_v21 = vpack.c.bf16 %v374_v19, %v372_v13  ;;  %v317_v22 = vpop.f32.mrf.mxu0  ;;  %v337_v23 = vpop.f32.mrf.mxu1 }
  0xcf   : > { %683 = vst [vmem:[%s1024_s20 + $0x50] sm:$0xff] %v647_v20  }
  0xd0   : > { %687 = vst [vmem:[%s1024_s20 + $0x70] sm:$0xff] %v667_v21  }
  0xd4   : > { %v357_v24 = vpop.f32.mrf.mxu2  ;;  %v377_v25 = vpop.f32.mrf.mxu3 }
  0xd5   : > { %v319_v26 = vpop.f32.mrf.mxu0  ;;  %v339_v27 = vpop.f32.mrf.mxu1 }
  0xd6   : > { %v612_v28 = vpack.c.bf16 %v319_v26, %v317_v22  ;;  %v632_v29 = vpack.c.bf16 %v339_v27, %v337_v23 }
  0xd8   : > { %676 = vst [vmem:[%s1024_s20 + $0x18] sm:$0xff] %v612_v28  }
  0xd9   : > { %680 = vst [vmem:[%s1024_s20 + $0x38] sm:$0xff] %v632_v29  }
  0xdc   : > { %v359_v30 = vpop.f32.mrf.mxu2  ;;  %v379_v31 = vpop.f32.mrf.mxu3 }
  0xdd   : > { %v652_v32 = vpack.c.bf16 %v359_v30, %v357_v24  ;;  %v672_v33 = vpack.c.bf16 %v379_v31, %v377_v25 }
  0xdf   : > { %684 = vst [vmem:[%s1024_s20 + $0x58] sm:$0xff] %v652_v32  }
  0xe0   : > { %688 = vst [vmem:[%s1024_s20 + $0x78] sm:$0xff] %v672_v33  }
  0xe1   : > { %779 = shalt.err (!%p776_p5)
}
  0xe2   : > { %s832_s8 = smov 64   ;;  %s833_s15 = smov 4  }
  0xe3   : > { %695 = dma.vmem_to_hbm [thread:$0]  (%p889_p4), %s462_s27, 2048, %s464_s28, %s447_s12, %s832_s8, %s832_s8, %s833_s15  }
  0xe4 PF: > { %p701_p6 = scmp.ge.s32.totalorder %s830_s14, 2  ;;  %s478_s16 = sand.u32 1, %s810_s9  }
  0xe5   : > { %s479_s18 = scalar_lea.sflag [#allocation3], %s478_s16 }
  0xe6   : > { %p698_p7 = pnand %p701_p6, %p896_p8 }
  0xe8   : > { %p699_p9 = pneg %p698_p7 }
  0xea   : > { %805 = dma.done.wait (%p699_p9), %s479_s18, 2048  }
  0xeb   : > { %807 = vsyncadd (%p699_p9), %s479_s18, 4294965248  ;;  %s15_s14 = sadd.s32 1, %s830_s14   ;;  %s1086_s9 = smov %s814_s10 }
  0xec   : > { %p12_p10 = scmp.ge.s32.totalorder %s15_s14, 4   ;;  %s1087_s10 = smov %s818_s11 }
  0xed   : > { %s1088_s11 = smov %s902_s22  ;;  %s1089_s12 = smov %s826_s13 }
  0xee   : > { %s1090_s13 = smov %s1092_s17  ;;  %14 = sbr.rel (!%p12_p10) target bundleno = 4 (0x4), region = 66 }
  0xf3   :  { %485 = vsyncpa [#allocation3], 1 }
  0xf4   :  { %487 = vsyncpa [#allocation3 + $0x1], 1 }

</bundles_post_ra>
